<compile_context>
chip_gen: v7x
topology: tpu7x:2x2x1
jax: 0.10.0
libtpu: 0.0.40
codegen_flags: <defaults>
</compile_context>

<pallas_src>
import functools
import math

import jax
import jax.numpy as jnp
from jax import lax
from jax.experimental import pallas as pl
from jax.experimental.pallas import tpu as pltpu

LANE = 128  # lane-dense padded width for hidden/output feature axes


def _fused_mlp_kernel(x_ref, w0_ref, b0_ref, wh_ref, bh_ref, wl_ref, bl_ref,
                      o_ref, *, n_hidden: int):
    """Entire MLP in one kernel: matmuls on the MXU (f32 acc), bias+ReLU on the VPU."""
    # Layer 0: (B, D_in) @ (D_in, HP) + (1, HP), ReLU.
    o = jnp.dot(x_ref[...], w0_ref[...], preferred_element_type=jnp.float32)
    o = jnp.maximum(o + b0_ref[...], 0.0)

    # Hidden layers: stacked weights (n_hidden, HP, HP), fully unrolled loop.
    def body(i, acc):
        y = jnp.dot(acc, wh_ref[i], preferred_element_type=jnp.float32)
        return jnp.maximum(y + bh_ref[i], 0.0)

    if n_hidden > 0:
        o = lax.fori_loop(0, n_hidden, body, o, unroll=True)

    # Final layer: no ReLU. Output axis padded to 128 lanes -> unmasked store.
    y = jnp.dot(o, wl_ref[...], preferred_element_type=jnp.float32)
    o_ref[...] = (y + bl_ref[...]).astype(o_ref.dtype)


def fused_mlp(x, w0, b0, wh, bh, wl, bl):
    batch = x.shape[0]
    out_p = wl.shape[1]
    n_hidden = wh.shape[0]
    kernel = functools.partial(_fused_mlp_kernel, n_hidden=n_hidden)
    vmem = pl.BlockSpec(memory_space=pltpu.MemorySpace.VMEM)
    return pl.pallas_call(
        kernel,
        out_shape=jax.ShapeDtypeStruct((batch, out_p), jnp.float32),
        in_specs=[vmem] * 7,
        out_specs=vmem,
    )(x, w0, b0, wh, bh, wl, bl)


# ----------------------------- parameter setup -----------------------------

def xavier_uniform(key, fan_in, fan_out, gain):
    """Matches torch.nn.init.xavier_uniform_ semantics (deterministic given key)."""
    bound = gain * math.sqrt(6.0 / (fan_in + fan_out))
    # stored as [in, out] so the kernel computes x @ W directly
    return jax.random.uniform(
        key, (fan_in, fan_out), dtype=jnp.float32, minval=-bound, maxval=bound
    )


def init_example_net(key, input_dim, output_dim, n_neurons, n_hidden):
    """Build (W, b) per layer, mirroring ExampleNet.__init__ (unpadded shapes)."""
    relu_gain = math.sqrt(2.0)   # nn.init.calculate_gain('relu')
    linear_gain = 1.0            # nn.init.calculate_gain('linear')
    dims = [input_dim] + [n_neurons] * (n_hidden + 1) + [output_dim]
    params = []
    for li in range(len(dims) - 1):
        key, wk = jax.random.split(key)
        gain = linear_gain if li == len(dims) - 2 else relu_gain
        w = xavier_uniform(wk, dims[li], dims[li + 1], gain)
        # PyTorch nn.Linear default bias init: U(-1/sqrt(fan_in), 1/sqrt(fan_in))
        key, bk = jax.random.split(key)
        bb = 1.0 / math.sqrt(dims[li])
        b = jax.random.uniform(
            bk, (1, dims[li + 1]), dtype=jnp.float32, minval=-bb, maxval=bb
        )
        params.append((w, b))
    return params


def _pad_cols(a, width):
    return jnp.pad(a, ((0, 0), (0, width - a.shape[1])))


def _pad_rows_cols(a, rows, cols):
    return jnp.pad(a, ((0, rows - a.shape[0]), (0, cols - a.shape[1])))


def pack_params(params, lane=LANE):
    """Zero-pad feature axes to `lane` and stack hidden layers.

    Zero padding is exact: padded activation lanes are 0 (zero weight columns,
    zero bias, ReLU(0)=0) and padded weight rows only ever multiply those zeros.
    """
    (w0, b0), hidden, (wl, bl) = params[0], params[1:-1], params[-1]
    hp, op = lane, lane
    w0p = _pad_cols(w0, hp)                      # (D_in, HP)
    b0p = _pad_cols(b0, hp)                      # (1, HP)
    if hidden:
        whp = jnp.stack([_pad_rows_cols(w, hp, hp) for w, _ in hidden])  # (n_hidden, HP, HP)
        bhp = jnp.stack([_pad_cols(b, hp) for _, b in hidden])           # (n_hidden, 1, HP)
    else:
        whp = jnp.zeros((0, hp, hp), jnp.float32)
        bhp = jnp.zeros((0, 1, hp), jnp.float32)
    wlp = _pad_rows_cols(wl, hp, op)             # (HP, OP)
    blp = _pad_cols(bl, op)                      # (1, OP)
    return w0p, b0p, whp, bhp, wlp, blp


def example_net_forward(packed, x, output_dim):
    """Forward pass (matches ExampleNet.forward): one fused kernel, slice real lanes."""
    out_padded = fused_mlp(x.astype(jnp.float32), *packed)
    return out_padded[:, :output_dim]


if __name__ == "__main__":
    # Small shapes consistent with the module: input_shape=(32,), output_shape=(4,),
    # n_neurons=64, n_hidden=2, batch=8.
    input_dim, output_dim = 32, 4
    n_neurons, n_hidden = 64, 2
    batch = 8

    key = jax.random.PRNGKey(0)
    key, xk = jax.random.split(key)
    x = jax.random.normal(xk, (batch, input_dim), dtype=jnp.float32)

    params = init_example_net(key, input_dim, output_dim, n_neurons, n_hidden)
    packed = pack_params(params)

    out = example_net_forward(packed, x, output_dim)
    out = jax.block_until_ready(out)

    # Sanity check against a plain-JAX reference of the same (unpadded) math.
    ref = x
    for w, b in params[:-1]:
        ref = jnp.maximum(ref @ w + b, 0.0)
    ref = ref @ params[-1][0] + params[-1][1]
    assert out.shape == (batch, output_dim)
    assert jnp.allclose(out, ref, atol=1e-5, rtol=1e-5)

    print("KERNEL_OK")
</pallas_src>

<mosaic_0001>
module attributes {stable_mosaic.version = 11 : i64} {
  func.func @_fused_mlp_kernel(%arg0: memref<8x32xf32, #tpu.memory_space<vmem>>, %arg1: memref<32x128xf32, #tpu.memory_space<vmem>>, %arg2: memref<1x128xf32, #tpu.memory_space<vmem>>, %arg3: memref<2x128x128xf32, #tpu.memory_space<vmem>>, %arg4: memref<2x1x128xf32, #tpu.memory_space<vmem>>, %arg5: memref<128x128xf32, #tpu.memory_space<vmem>>, %arg6: memref<1x128xf32, #tpu.memory_space<vmem>>, %arg7: memref<8x128xf32, #tpu.memory_space<vmem>>) attributes {dimension_semantics = [], scalar_prefetch = 0 : i64, scratch_operands = 0 : i64, tpu.core_type = #tpu.core_type<tc>} {
    %c0 = arith.constant 0 : index
    %c0_0 = arith.constant 0 : index
    %0 = vector.load %arg0[%c0, %c0_0] : memref<8x32xf32, #tpu.memory_space<vmem>>, vector<8x32xf32>
    %c0_1 = arith.constant 0 : index
    %c0_2 = arith.constant 0 : index
    %1 = vector.load %arg1[%c0_1, %c0_2] : memref<32x128xf32, #tpu.memory_space<vmem>>, vector<32x128xf32>
    %cst = arith.constant dense<0.000000e+00> : vector<8x128xf32>
    %2 = tpu.matmul %0, %1, %cst {dimension_numbers = #tpu.dot_dimension_numbers<[1], [0], [0], [1], [0, 0, 1, 1], [], []>} : vector<8x32xf32>, vector<32x128xf32>, vector<8x128xf32> -> vector<8x128xf32>
    %c0_3 = arith.constant 0 : index
    %c0_4 = arith.constant 0 : index
    %3 = vector.load %arg2[%c0_3, %c0_4] : memref<1x128xf32, #tpu.memory_space<vmem>>, vector<1x128xf32>
    %4 = vector.broadcast %3 : vector<1x128xf32> to vector<8x128xf32>
    %5 = arith.addf %2, %4 : vector<8x128xf32>
    %cst_5 = arith.constant 0.000000e+00 : f32
    %6 = vector.broadcast %cst_5 : f32 to vector<8x128xf32>
    %7 = arith.maximumf %5, %6 : vector<8x128xf32>
    %c0_i32 = arith.constant 0 : i32
    %8 = arith.index_cast %c0_i32 : i32 to index
    %c0_6 = arith.constant 0 : index
    %c0_7 = arith.constant 0 : index
    %9 = vector.load %arg3[%8, %c0_6, %c0_7] : memref<2x128x128xf32, #tpu.memory_space<vmem>>, vector<1x128x128xf32>
    %10 = vector.shape_cast %9 : vector<1x128x128xf32> to vector<128x128xf32>
    %cst_8 = arith.constant dense<0.000000e+00> : vector<8x128xf32>
    %11 = tpu.matmul %7, %10, %cst_8 {dimension_numbers = #tpu.dot_dimension_numbers<[1], [0], [0], [1], [0, 0, 1, 1], [], []>} : vector<8x128xf32>, vector<128x128xf32>, vector<8x128xf32> -> vector<8x128xf32>
    %12 = arith.index_cast %c0_i32 : i32 to index
    %c0_9 = arith.constant 0 : index
    %c0_10 = arith.constant 0 : index
    %13 = vector.load %arg4[%12, %c0_9, %c0_10] : memref<2x1x128xf32, #tpu.memory_space<vmem>>, vector<1x1x128xf32>
    %14 = vector.shape_cast %13 : vector<1x1x128xf32> to vector<1x128xf32>
    %15 = vector.broadcast %14 : vector<1x128xf32> to vector<8x128xf32>
    %16 = arith.addf %11, %15 : vector<8x128xf32>
    %cst_11 = arith.constant 0.000000e+00 : f32
    %17 = vector.broadcast %cst_11 : f32 to vector<8x128xf32>
    %18 = arith.maximumf %16, %17 : vector<8x128xf32>
    %c1_i32 = arith.constant 1 : i32
    %19 = arith.index_cast %c1_i32 : i32 to index
    %c0_12 = arith.constant 0 : index
    %c0_13 = arith.constant 0 : index
    %20 = vector.load %arg3[%19, %c0_12, %c0_13] : memref<2x128x128xf32, #tpu.memory_space<vmem>>, vector<1x128x128xf32>
    %21 = vector.shape_cast %20 : vector<1x128x128xf32> to vector<128x128xf32>
    %cst_14 = arith.constant dense<0.000000e+00> : vector<8x128xf32>
    %22 = tpu.matmul %18, %21, %cst_14 {dimension_numbers = #tpu.dot_dimension_numbers<[1], [0], [0], [1], [0, 0, 1, 1], [], []>} : vector<8x128xf32>, vector<128x128xf32>, vector<8x128xf32> -> vector<8x128xf32>
    %23 = arith.index_cast %c1_i32 : i32 to index
    %c0_15 = arith.constant 0 : index
    %c0_16 = arith.constant 0 : index
    %24 = vector.load %arg4[%23, %c0_15, %c0_16] : memref<2x1x128xf32, #tpu.memory_space<vmem>>, vector<1x1x128xf32>
    %25 = vector.shape_cast %24 : vector<1x1x128xf32> to vector<1x128xf32>
    %26 = vector.broadcast %25 : vector<1x128xf32> to vector<8x128xf32>
    %27 = arith.addf %22, %26 : vector<8x128xf32>
    %cst_17 = arith.constant 0.000000e+00 : f32
    %28 = vector.broadcast %cst_17 : f32 to vector<8x128xf32>
    %29 = arith.maximumf %27, %28 : vector<8x128xf32>
    %c2_i32 = arith.constant 2 : i32
    %c0_18 = arith.constant 0 : index
    %c0_19 = arith.constant 0 : index
    %30 = vector.load %arg5[%c0_18, %c0_19] : memref<128x128xf32, #tpu.memory_space<vmem>>, vector<128x128xf32>
    %cst_20 = arith.constant dense<0.000000e+00> : vector<8x128xf32>
    %31 = tpu.matmul %29, %30, %cst_20 {dimension_numbers = #tpu.dot_dimension_numbers<[1], [0], [0], [1], [0, 0, 1, 1], [], []>} : vector<8x128xf32>, vector<128x128xf32>, vector<8x128xf32> -> vector<8x128xf32>
    %c0_21 = arith.constant 0 : index
    %c0_22 = arith.constant 0 : index
    %32 = vector.load %arg6[%c0_21, %c0_22] : memref<1x128xf32, #tpu.memory_space<vmem>>, vector<1x128xf32>
    %33 = vector.broadcast %32 : vector<1x128xf32> to vector<8x128xf32>
    %34 = arith.addf %31, %33 : vector<8x128xf32>
    %c0_23 = arith.constant 0 : index
    %c0_24 = arith.constant 0 : index
    %35 = vector.load %arg7[%c0_23, %c0_24] : memref<8x128xf32, #tpu.memory_space<vmem>>, vector<8x128xf32>
    tpu.vector_store %arg7[%c0_23, %c0_24], %34 {strides = array<i32>} : memref<8x128xf32, #tpu.memory_space<vmem>>, vector<8x128xf32>,
    return
  }
}

</mosaic_0001>

<bundles_post_ra>
// kernel: tpu_custom_call.1
= control target key start
LH: loop header
LB: loop body
LE: loop exit
PB: predicated region body
PF: predicated region fallthrough
CT: control target
= control target key end

     0   :  { %12 = vsyncpa [#allocation3], 0  ;;  %s1017_s0 = inlined_call_operand.hbm [shape: f32[8,32], index: 0, kind: input, shape index: {}]   ;;  %s1018_s1 = inlined_call_operand.hbm [shape: f32[32,128], index: 1, kind: input, shape index: {}]   ;;  %s1019_s2 = inlined_call_operand.vmem [shape: f32[1,128], index: 2, kind: input, shape index: {}]   ;;  %s1020_s3 = inlined_call_operand.hbm [shape: f32[2,128,128], index: 3, kind: input, shape index: {}]   ;;  %s1021_s4 = inlined_call_operand.vmem [shape: f32[2,1,128], index: 4, kind: input, shape index: {}]   ;;  %s1022_s5 = inlined_call_operand.hbm [shape: f32[128,128], index: 5, kind: input, shape index: {}]   ;;  %s1023_s6 = inlined_call_operand.vmem [shape: f32[1,128], index: 6, kind: input, shape index: {}]   ;;  %s1024_s7 = inlined_call_operand.hbm [shape: f32[8,128], index: 7, kind: output, shape index: {}]  }
   0x1   :  { %13 = vsyncpa [#allocation6], 0 }
   0x2   :  { %14 = vsyncpa [#allocation9], 0 }
   0x3   :  { %15 = vsyncpa [#allocation4], 0  ;;  %s852_s24 = smov [#allocation5]   ;;  %s734_s28 = scalar_lea.hbm %s1018_s1, 512 }
   0x4   :  { %s31_s25 = sshll.u32 %s852_s24, 4  ;;  %p735_p0 = scmp.ne.s32.totalorder %s1018_s1, %s734_s28  ;;  %s32_s25 = int_to_ptr.vmem [resolvable:$true] %s31_s25 }
   0x5   :  { %p738_p1 = scmp.lt.u32.totalorder %s734_s28, %s1018_s1 }
   0x7   :  { %p740_p2 = pnand %p738_p1, %p735_p0 }
   0x9   :  { %743 = shalt.err (!%p740_p2)
}
   0xa   :  { %s744_s10 = scalar_lea.vmem %s32_s25, 512  ;;  %p749_p4 = scmp.lt.s32.totalorder %s32_s25, %s32_s25 }
   0xb   :  { %p745_p3 = scmp.ne.s32.totalorder %s32_s25, %s744_s10  ;;  %p750_p5 = scmp.lt.s32.totalorder %s744_s10, %s744_s10 }
   0xd   :  { %p751_p6 = por %p750_p5, %p749_p4 }
   0xf   :  { %p752_p7 = pnand %p751_p6, %p745_p3 }
  0x11   :  { %755 = shalt.err (!%p752_p7)
}
  0x12   :  { %s853_s11 = smov 128   ;;  %s854_s12 = smov 8  }
  0x13   :  { %37 = dma.hbm_to_vmem [thread:$0]  %s1018_s1, 512, %s32_s25, [#allocation6], %s853_s11, %s853_s11, %s854_s12  }
  0x14   :  { %s855_s15 = smov [#allocation2]   ;;  %s856_s17 = smov [#allocation7]  }
  0x15   :  { %s22_s16 = sshll.u32 %s855_s15, 4  ;;  %s45_s18 = sshll.u32 %s856_s17, 4  ;;  %s23_s16 = int_to_ptr.vmem [resolvable:$true] %s22_s16  ;;  %s46_s18 = int_to_ptr.vmem [resolvable:$true] %s45_s18 }
  0x16   :  { %s756_s21 = scalar_lea.hbm %s1017_s0, 128 }
  0x17   :  { %p757_p8 = scmp.ne.s32.totalorder %s1017_s0, %s756_s21  ;;  %p760_p9 = scmp.lt.u32.totalorder %s756_s21, %s1017_s0 }
  0x19   :  { %p762_p10 = pnand %p760_p9, %p757_p8 }
  0x1b   :  { %765 = shalt.err (!%p762_p10)
}
  0x1c   :  { %s766_s1 = scalar_lea.vmem %s23_s16, 128  ;;  %p771_p12 = scmp.lt.s32.totalorder %s23_s16, %s23_s16 }
  0x1d   :  { %p767_p11 = scmp.ne.s32.totalorder %s23_s16, %s766_s1  ;;  %p772_p13 = scmp.lt.s32.totalorder %s766_s1, %s766_s1 }
  0x1f   :  { %p773_p0 = por %p772_p13, %p771_p12 }
  0x21   :  { %p774_p1 = pnand %p773_p0, %p767_p11 }
  0x23   :  { %777 = shalt.err (!%p774_p1)
}
  0x24   :  { %25 = dma.hbm_to_vmem [thread:$0]  %s1017_s0, 128, %s23_s16, [#allocation3]  }
  0x25   :  { %s778_s30 = scalar_lea.hbm %s1020_s3, 4096 }
  0x26   :  { %p779_p2 = scmp.ne.s32.totalorder %s1020_s3, %s778_s30  ;;  %p782_p3 = scmp.lt.u32.totalorder %s778_s30, %s1020_s3 }
  0x28   :  { %p784_p4 = pnand %p782_p3, %p779_p2 }
  0x2a   :  { %787 = shalt.err (!%p784_p4)
}
  0x2b   :  { %s788_s14 = scalar_lea.vmem %s46_s18, 4096  ;;  %p793_p6 = scmp.lt.s32.totalorder %s46_s18, %s46_s18 }
  0x2c   :  { %p789_p5 = scmp.ne.s32.totalorder %s46_s18, %s788_s14  ;;  %p794_p7 = scmp.lt.s32.totalorder %s788_s14, %s788_s14 }
  0x2e   :  { %p795_p8 = por %p794_p7, %p793_p6 }
  0x30   :  { %p796_p9 = pnand %p795_p8, %p789_p5 }
  0x32   :  { %799 = shalt.err (!%p796_p9)
}
  0x33   :  { %51 = dma.hbm_to_vmem [thread:$0]  %s1020_s3, 4096, %s46_s18, [#allocation6], %s853_s11, %s853_s11, %s854_s12  }
  0x34   :  { %s857_s16 = smov [#allocation8]   ;;  %s800_s21 = scalar_lea.hbm %s1022_s5, 2048 }
  0x35   :  { %s59_s17 = sshll.u32 %s857_s16, 4  ;;  %p801_p10 = scmp.ne.s32.totalorder %s1022_s5, %s800_s21  ;;  %s60_s17 = int_to_ptr.vmem [resolvable:$true] %s59_s17 }
  0x36   :  { %p804_p11 = scmp.lt.u32.totalorder %s800_s21, %s1022_s5 }
  0x38   :  { %p806_p12 = pnand %p804_p11, %p801_p10 }
  0x3a   :  { %809 = shalt.err (!%p806_p12)
}
  0x3b   :  { %s810_s1 = scalar_lea.vmem %s60_s17, 2048  ;;  %p815_p0 = scmp.lt.s32.totalorder %s60_s17, %s60_s17 }
  0x3c   :  { %p811_p13 = scmp.ne.s32.totalorder %s60_s17, %s810_s1  ;;  %p816_p1 = scmp.lt.s32.totalorder %s810_s1, %s810_s1 }
  0x3e   :  { %p817_p2 = por %p816_p1, %p815_p0 }
  0x40   :  { %p818_p3 = pnand %p817_p2, %p811_p13 }
  0x42   :  { %821 = shalt.err (!%p818_p3)
}
  0x43   :  { %65 = dma.hbm_to_vmem [thread:$0]  %s1022_s5, 2048, %s60_s17, [#allocation9], %s853_s11, %s853_s11, %s854_s12  }
  0x44   :  { %844 = dma.done.wait [#allocation3], 128  }
  0x45   :  { %845 = vsyncadd [#allocation3], 4294967168 }
  0x46   :  { %846 = dma.done.wait [#allocation6], 4608  }
  0x47   :  { %847 = vsyncadd [#allocation6], 4294962688 }
  0x48   :  { %848 = dma.done.wait [#allocation9], 2048  }
  0x49   :  { %849 = vsyncadd [#allocation9], 4294965248  ;;  %v858_v0 = vmov 0.0|0.0   ;;  %vm859_vm0 = vmmov 0   ;;  %v860_v1 = vmov 0.0   ;;  %v81_v2 = vld [vmem:[#allocation5] sm:$0xff] }
  0x4a   :  { %646 = vmatprep.subr.bf16.mxu0 %v858_v0  ;;  %538 = vmatprep.mubr.msk.f32.mxu0 %vm859_vm0, %v860_v1  ;;  %v82_v3 = vld [vmem:[#allocation5 + $0x8] sm:$0xff]  ;;  %v83_v4 = vld [vmem:[#allocation5 + $0x10] sm:$0xff]  ;;  %v84_v6 = vld [vmem:[#allocation5 + $0x18] sm:$0xff]  ;;  %vm92_vm1 = vcmask 261120   ;;  %s861_s30 = smov [#allocation10]  }
  0x4b   :  { %652 = vmatprep.subr.bf16.mxu1 %v858_v0  ;;  %573 = vmatprep.mubr.msk.f32.mxu1 %vm859_vm0, %v860_v1  ;;  %v647_v5 = vpack.c.bf16 %v82_v3, %v81_v2  ;;  %v167_v7 = vld [vmem:[#allocation7] sm:$0xff]  ;;  %v168_v8 = vld [vmem:[#allocation7 + $0x8] sm:$0xff]  ;;  %v169_v9 = vld [vmem:[#allocation7 + $0x10] sm:$0xff]  ;;  %v650_v11 = vpack.c.bf16 %v84_v6, %v83_v4  ;;  %s457_s8 = sshll.u32 %s861_s30, 4  ;;  %s458_s8 = int_to_ptr.vmem [resolvable:$true] %s457_s8 }
  0x4c   :  { %v170_v10 = vld [vmem:[#allocation7 + $0x18] sm:$0xff]  ;;  %v653_v12 = vpack.c.bf16 %v168_v8, %v167_v7  ;;  %v171_v14 = vld [vmem:[#allocation7 + $0x20] sm:$0xff]  ;;  %v172_v15 = vld [vmem:[#allocation7 + $0x28] sm:$0xff]  ;;  %s822_s9 = scalar_lea.vmem %s458_s8, 128  ;;  %p827_p5 = scmp.lt.s32.totalorder %s458_s8, %s458_s8 }
  0x4d   :  { %648 = vmatpush3.bf16.msra.mxu0 %v647_v5  ;;  %v656_v13 = vpack.c.bf16 %v170_v10, %v169_v9  ;;  %v80_v16 = vld [vmem:[#allocation2] sm:$0xff]  ;;  %v659_v17 = vpack.c.bf16 %v172_v15, %v171_v14  ;;  %v173_v18 = vld [vmem:[#allocation7 + $0x30] sm:$0xff]  ;;  %v175_v21 = vld [vmem:[#allocation7 + $0x40] sm:$0xff]  ;;  %p823_p4 = scmp.ne.s32.totalorder %s458_s8, %s822_s9  ;;  %p828_p6 = scmp.lt.s32.totalorder %s822_s9, %s822_s9 }
  0x4e   :  { %649 = vmatprep.subr.bf16.mxu0 %v858_v0  ;;  %654 = vmatpush3.bf16.msra.mxu1 %v653_v12  ;;  %v174_v19 = vld [vmem:[#allocation7 + $0x38] sm:$0xff]  ;;  %v176_v22 = vld [vmem:[#allocation7 + $0x48] sm:$0xff]  ;;  %v177_v24 = vld [vmem:[#allocation7 + $0x50] sm:$0xff] }
  0x4f   :  { %655 = vmatprep.subr.bf16.mxu1 %v858_v0  ;;  %v662_v20 = vpack.c.bf16 %v174_v19, %v173_v18  ;;  %v665_v23 = vpack.c.bf16 %v176_v22, %v175_v21  ;;  %v178_v25 = vld [vmem:[#allocation7 + $0x58] sm:$0xff]  ;;  %v179_v27 = vld [vmem:[#allocation7 + $0x60] sm:$0xff]  ;;  %v180_v28 = vld [vmem:[#allocation7 + $0x68] sm:$0xff]  ;;  %p829_p7 = por %p828_p6, %p827_p5 }
  0x50   :  { %v668_v26 = vpack.c.bf16 %v178_v25, %v177_v24  ;;  %v671_v29 = vpack.c.bf16 %v180_v28, %v179_v27  ;;  %v181_v30 = vld [vmem:[#allocation7 + $0x70] sm:$0xff]  ;;  %v182_v31 = vld [vmem:[#allocation7 + $0x78] sm:$0xff]  ;;  %v262_v33 = vld [vmem:[#allocation7 + $0x80] sm:$0xff] }
  0x51   :  { %651 = vmatpush3.bf16.msra.mxu0 %v650_v11  ;;  %v674_v32 = vpack.c.bf16 %v182_v31, %v181_v30  ;;  %v263_v34 = vld [vmem:[#allocation7 + $0x88] sm:$0xff]  ;;  %v264_v35 = vld [vmem:[#allocation7 + $0x90] sm:$0xff]  ;;  %v265_v37 = vld [vmem:[#allocation7 + $0x98] sm:$0xff]  ;;  %p830_p8 = pnand %p829_p7, %p823_p4 }
  0x52   :  { %676 = vmatprep.subr.bf16.mxu0 %v858_v0  ;;  %657 = vmatpush3.bf16.msra.mxu1 %v656_v13  ;;  %v677_v36 = vpack.c.bf16 %v263_v34, %v262_v33  ;;  %v680_v38 = vpack.c.bf16 %v265_v37, %v264_v35  ;;  %v266_v39 = vld [vmem:[#allocation7 + $0xa0] sm:$0xff]  ;;  %v267_v40 = vld [vmem:[#allocation7 + $0xa8] sm:$0xff]  ;;  %v268_v42 = vld [vmem:[#allocation7 + $0xb0] sm:$0xff] }
  0x53   :  { %658 = vmatprep.subr.bf16.mxu1 %v858_v0  ;;  %v683_v41 = vpack.c.bf16 %v267_v40, %v266_v39  ;;  %v269_v43 = vld [vmem:[#allocation7 + $0xb8] sm:$0xff]  ;;  %v270_v45 = vld [vmem:[#allocation7 + $0xc0] sm:$0xff]  ;;  %v271_v46 = vld [vmem:[#allocation7 + $0xc8] sm:$0xff] }
  0x54   :  { %539 = vmatmul.mubr.msk.f32.vlgmr.msra.gmra.mrb[0].mxu0 %vm92_vm1, %v80_v16  ;;  %v686_v44 = vpack.c.bf16 %v269_v43, %v268_v42  ;;  %v689_v47 = vpack.c.bf16 %v271_v46, %v270_v45  ;;  %v272_v48 = vld [vmem:[#allocation7 + $0xd0] sm:$0xff]  ;;  %v273_v49 = vld [vmem:[#allocation7 + $0xd8] sm:$0xff]  ;;  %v274_v51 = vld [vmem:[#allocation7 + $0xe0] sm:$0xff] }
  0x55   :  { %608 = vmatprep.mubr.msk.f32.mxu0 %vm859_vm0, %v860_v1  ;;  %678 = vmatpush3.bf16.msra.mxu0 %v677_v36  ;;  %v692_v50 = vpack.c.bf16 %v273_v49, %v272_v48  ;;  %v275_v52 = vld [vmem:[#allocation7 + $0xe8] sm:$0xff]  ;;  %v468_v54 = vld [vmem:[%s1019_s2] ss:$0 sm:$0xff]  ;;  %v276_v59 = vld [vmem:[#allocation7 + $0xf0] sm:$0xff] }
  0x56   :  { %660 = vmatpush3.bf16.msra.mxu1 %v659_v17  ;;  %679 = vmatprep.subr.bf16.mxu0 %v858_v0  ;;  %v695_v53 = vpack.c.bf16 %v275_v52, %v274_v51  ;;  %v277_v60 = vld [vmem:[#allocation7 + $0xf8] sm:$0xff]  ;;  %v357_v62 = vld [vmem:[#allocation8] sm:$0xff]  ;;  %v358_v63 = vld [vmem:[#allocation8 + $0x8] sm:$0xff] }
  0x57   :  { %661 = vmatprep.subr.bf16.mxu1 %v858_v0  ;;  %v698_v61 = vpack.c.bf16 %v277_v60, %v276_v59  ;;  %v359_v2 = vld [vmem:[#allocation8 + $0x10] sm:$0xff]  ;;  %v701_v3 = vpack.c.bf16 %v358_v63, %v357_v62  ;;  %v360_v4 = vld [vmem:[#allocation8 + $0x18] sm:$0xff]  ;;  %v361_v6 = vld [vmem:[#allocation8 + $0x20] sm:$0xff] }
  0x58   :  { %v704_v5 = vpack.c.bf16 %v360_v4, %v359_v2  ;;  %v362_v7 = vld [vmem:[#allocation8 + $0x28] sm:$0xff]  ;;  %v364_v9 = vld [vmem:[#allocation8 + $0x38] sm:$0xff]  ;;  %v365_v11 = vld [vmem:[#allocation8 + $0x40] sm:$0xff] }
  0x59   :  { %681 = vmatpush3.bf16.msra.mxu0 %v680_v38  ;;  %v707_v8 = vpack.c.bf16 %v362_v7, %v361_v6  ;;  %v366_v12 = vld [vmem:[#allocation8 + $0x48] sm:$0xff]  ;;  %v367_v14 = vld [vmem:[#allocation8 + $0x50] sm:$0xff]  ;;  %v368_v15 = vld [vmem:[#allocation8 + $0x58] sm:$0xff] }
  0x5a   :  { %663 = vmatpush3.bf16.msra.mxu1 %v662_v20  ;;  %682 = vmatprep.subr.bf16.mxu0 %v858_v0  ;;  %v713_v13 = vpack.c.bf16 %v366_v12, %v365_v11  ;;  %v716_v16 = vpack.c.bf16 %v368_v15, %v367_v14  ;;  %v369_v17 = vld [vmem:[#allocation8 + $0x60] sm:$0xff]  ;;  %v370_v18 = vld [vmem:[#allocation8 + $0x68] sm:$0xff]  ;;  %v470_v20 = vld [vmem:[%s1021_s4] ss:$0 sm:$0xff] }
  0x5b   :  { %664 = vmatprep.subr.bf16.mxu1 %v858_v0  ;;  %v719_v19 = vpack.c.bf16 %v370_v18, %v369_v17  ;;  %v371_v25 = vld [vmem:[#allocation8 + $0x70] sm:$0xff]  ;;  %v472_v28 = vld [vmem:[%s1021_s4 + $0x1] ss:$0 sm:$0xff] }
  0x5d   :  { %684 = vmatpush3.bf16.msra.mxu0 %v683_v41 }
  0x5e   :  { %666 = vmatpush3.bf16.msra.mxu1 %v665_v23  ;;  %685 = vmatprep.subr.bf16.mxu0 %v858_v0 }
  0x5f   :  { %667 = vmatprep.subr.bf16.mxu1 %v858_v0 }
  0x61   :  { %687 = vmatpush3.bf16.msra.mxu0 %v686_v44 }
  0x62   :  { %669 = vmatpush3.bf16.msra.mxu1 %v668_v26  ;;  %688 = vmatprep.subr.bf16.mxu0 %v858_v0  ;;  %v372_v26 = vld [vmem:[#allocation8 + $0x78] sm:$0xff] }
  0x63   :  { %670 = vmatprep.subr.bf16.mxu1 %v858_v0  ;;  %v722_v27 = vpack.c.bf16 %v372_v26, %v371_v25 }
  0x65   :  { %690 = vmatpush3.bf16.msra.mxu0 %v689_v47 }
  0x66   :  { %672 = vmatpush3.bf16.msra.mxu1 %v671_v29  ;;  %691 = vmatprep.subr.bf16.mxu0 %v858_v0 }
  0x67   :  { %673 = vmatprep.subr.bf16.mxu1 %v858_v0 }
  0x69   :  { %693 = vmatpush3.bf16.msra.mxu0 %v692_v50 }
  0x6a   :  { %675 = vmatpush3.bf16.msra.mxu1 %v674_v32  ;;  %694 = vmatprep.subr.bf16.mxu0 %v858_v0  ;;  %v473_v32 = vld [vmem:[%s1023_s6] ss:$0 sm:$0xff] }
  0x6b   :  { %700 = vmatprep.subr.bf16.mxu1 %v858_v0 }
  0x6d   :  { %696 = vmatpush3.bf16.msra.mxu0 %v695_v53 }
  0x6e   :  { %697 = vmatprep.subr.bf16.mxu0 %v858_v0 }
  0x71   :  { %699 = vmatpush3.bf16.msra.mxu0 %v698_v61 }
 0x127   :  { %v162_v55 = vpop.f32.mrb[0].mxu0 }
 0x128   :  { %v163_v56 = vadd.f32 %v468_v54, %v162_v55  ;;  %v540_v57 = vpop.f32.mrb[1].mxu0 }
 0x12a   :  { %v166_v58 = vmax.f32 %v163_v56, 0.0 }
 0x12c   :  { %574 = vmatmul.mubr.f32.vlgmr.msra.gmra.mrb[0].mxu1 %v166_v58 }
 0x12d   :  { %643 = vmatprep.mubr.msk.f32.mxu1 %vm859_vm0, %v860_v1  ;;  %702 = vmatpush3.bf16.msra.mxu1 %v701_v3  ;;  %v363_v1 = vld [vmem:[#allocation8 + $0x30] sm:$0xff] }
 0x12e   :  { %703 = vmatprep.subr.bf16.mxu1 %v858_v0  ;;  %v710_v10 = vpack.c.bf16 %v364_v9, %v363_v1 }
 0x131   :  { %705 = vmatpush3.bf16.msra.mxu1 %v704_v5 }
 0x132   :  { %706 = vmatprep.subr.bf16.mxu1 %v858_v0 }
 0x135   :  { %708 = vmatpush3.bf16.msra.mxu1 %v707_v8 }
 0x136   :  { %709 = vmatprep.subr.bf16.mxu1 %v858_v0 }
 0x139   :  { %711 = vmatpush3.bf16.msra.mxu1 %v710_v10 }
 0x13a   :  { %712 = vmatprep.subr.bf16.mxu1 %v858_v0 }
 0x13d   :  { %714 = vmatpush3.bf16.msra.mxu1 %v713_v13 }
 0x13e   :  { %715 = vmatprep.subr.bf16.mxu1 %v858_v0 }
 0x141   :  { %717 = vmatpush3.bf16.msra.mxu1 %v716_v16 }
 0x142   :  { %718 = vmatprep.subr.bf16.mxu1 %v858_v0 }
 0x145   :  { %720 = vmatpush3.bf16.msra.mxu1 %v719_v19 }
 0x146   :  { %721 = vmatprep.subr.bf16.mxu1 %v858_v0 }
 0x149   :  { %723 = vmatpush3.bf16.msra.mxu1 %v722_v27 }
 0x1ff   :  { %v256_v21 = vpop.f32.mrb[0].mxu1 }
 0x200   :  { %v257_v22 = vadd.f32 %v470_v20, %v256_v21  ;;  %v575_v23 = vpop.f32.mrb[1].mxu1 }
 0x202   :  { %v260_v24 = vmax.f32 %v257_v22, 0.0 }
 0x204   :  { %609 = vmatmul.mubr.f32.vlgmr.msra.gmra.mrb[2].mxu0 %v260_v24 }
 0x2d7   :  { %v352_v29 = vpop.f32.mrb[2].mxu0 }
 0x2d8   :  { %v353_v30 = vadd.f32 %v472_v28, %v352_v29  ;;  %v610_v0 = vpop.f32.mrb[3].mxu0 }
 0x2da   :  { %v356_v31 = vmax.f32 %v353_v30, 0.0 }
 0x2dc   :  { %644 = vmatmul.mubr.f32.vlgmr.msra.gmra.mrb[2].mxu1 %v356_v31 }
 0x3af   :  { %v446_v33 = vpop.f32.mrb[2].mxu1 }
 0x3b0   :  { %v447_v34 = vadd.f32 %v473_v32, %v446_v33  ;;  %v645_v35 = vpop.f32.mrb[3].mxu1 }
 0x3b2   :  { %450 = vst [vmem:[#allocation10] sm:$0xff] %v447_v34 }
 0x3b3   :  { %833 = shalt.err (!%p830_p8)
}
 0x3b4   :  { %s834_s13 = scalar_lea.hbm %s1024_s7, 128 }
 0x3b5   :  { %p835_p9 = scmp.ne.s32.totalorder %s1024_s7, %s834_s13  ;;  %p838_p10 = scmp.lt.u32.totalorder %s834_s13, %s1024_s7 }
 0x3b7   :  { %p840_p11 = pnand %p838_p10, %p835_p9 }
 0x3b9   :  { %843 = shalt.err (!%p840_p11)
}
 0x3ba   :  { %460 = dma.vmem_to_hbm [thread:$0]  %s458_s8, 128, %s1024_s7, [#allocation4]  }
 0x3bb   :  { %850 = dma.done.wait [#allocation4], 128  }
 0x3bc   :  { %851 = vsyncadd [#allocation4], 4294967168 }
 0x3bd   :  { %464 = vsyncpa [#allocation3], 1 }
 0x3be   :  { %465 = vsyncpa [#allocation6], 1 }
 0x3bf   :  { %466 = vsyncpa [#allocation9], 1 }
 0x3c0   :  { %467 = vsyncpa [#allocation4], 1 }

</bundles_post_ra>
